<compile_context>
chip_gen: v7x
topology: tpu7x:2x2x1
jax: 0.10.0
libtpu: 0.0.40
codegen_flags: <defaults>
</compile_context>

<pallas_src>
import functools
import math

import jax
import jax.numpy as jnp
from jax.experimental import pallas as pl
from jax.experimental.pallas import tpu as pltpu

_GELU_C = math.sqrt(2.0 / math.pi)


def _mlp_kernel(x_ref, wfc_ref, bfc_ref, wproj_ref, bproj_ref, o_ref, acc_ref,
                *, gelu_dtype):
    # x_ref:     (tm, D)      wfc_ref:   (D, th)    bfc_ref:   (1, th) f32
    # wproj_ref: (th, D)      bproj_ref: (1, D) f32
    # o_ref:     (tm, D)      acc_ref:   (tm, D) f32 scratch (H-resident)
    h = pl.program_id(1)

    # c_fc chunk: (tm, D) @ (D, th) on the MXU, f32 accumulation.
    a = jnp.dot(x_ref[...], wfc_ref[...], preferred_element_type=jnp.float32)
    a = (a + bfc_ref[...]).astype(gelu_dtype)

    # GELU(approximate='tanh'): 0.5*a*(1 + tanh(sqrt(2/pi)*(a + 0.044715*a^3)))
    # Runs in bf16 on v6e/v7x (bf16 VPU/EUP), f32 elsewhere.
    a = 0.5 * a * (1.0 + jnp.tanh(_GELU_C * (a + 0.044715 * a * a * a)))

    # c_proj chunk contribution, f32 accumulation on the MXU.
    contrib = jnp.dot(a.astype(wproj_ref.dtype), wproj_ref[...],
                      preferred_element_type=jnp.float32)

    @pl.when(h == 0)
    def _():
        acc_ref[...] = contrib          # first step: direct write, no zero-init

    @pl.when(h > 0)
    def _():
        acc_ref[...] += contrib

    @pl.when(h == pl.num_programs(1) - 1)
    def _():
        o_ref[...] = (acc_ref[...] + bproj_ref[...]).astype(o_ref.dtype)


def _round_up(x, m):
    return ((x + m - 1) // m) * m


def _sublane_pack(dtype):
    # Native sublane packing per element size: 8 (4B), 16 (2B), 32 (1B).
    return {4: 8, 2: 16, 1: 32}.get(jnp.dtype(dtype).itemsize, 8)


def _vmem_limit_bytes():
    # Generation-aware VMEM budget: leave headroom on 64-MiB-VMEM chips (v7x),
    # use most of the 128-MiB scratchpad on v5e/v6e.
    try:
        cap = int(pltpu.get_tpu_info().vmem_capacity_bytes)
    except Exception:
        cap = 128 * 1024 * 1024
    if cap <= 64 * 1024 * 1024:
        return 40 * 1024 * 1024
    return 100 * 1024 * 1024


def _default_gelu_dtype(x_dtype):
    # bf16 GELU only where VPU/EUP have bf16 paths (v6e / v7x).
    if jnp.dtype(x_dtype) != jnp.dtype(jnp.bfloat16):
        return jnp.float32
    try:
        kind = jax.devices()[0].device_kind.lower()
    except Exception:
        return jnp.float32
    if ("v6" in kind) or ("v7" in kind) or ("7x" in kind):
        return jnp.bfloat16
    return jnp.float32


def _pick_th(H, tile_h):
    """Pick hidden-chunk size. Prefer an exact 128-multiple divisor of H so no
    per-call weight padding copy is needed. Returns (th, Hp)."""
    if H <= tile_h:
        return H, H
    d = (tile_h // 128) * 128
    while d >= 128:
        if H % d == 0:
            return d, H
        d -= 128
    # Rare fallback (H not a multiple of 128): lane-aligned chunk + zero pad.
    th = max(128, (tile_h // 128) * 128)
    return th, _round_up(H, th)


def _footprint_bytes(tm, th, D, dt_size):
    dbl = 2                                     # BlockSpec double-buffering
    xio = dbl * 2 * tm * D * dt_size            # x tile + out tile
    wgt = dbl * 2 * D * th * dt_size            # W_fc + W_proj blocks
    bias = dbl * (th + D) * 4                   # f32 bias blocks
    acc = tm * D * 4                            # resident f32 accumulator
    inter = tm * th * (4 + dt_size)             # (tm, th) intermediate + cast copy
    return xio + wgt + bias + acc + inter


def mlp_forward(x, w_fc, b_fc, w_proj, b_proj, *, tile_m=512, tile_h=1024,
                gelu_dtype=None):
    """x: (B, T, D). w_fc: (D, 4D), b_fc: (4D,), w_proj: (4D, D), b_proj: (D,)."""
    B, T, D = x.shape
    H = w_fc.shape[1]
    M = B * T
    x2 = x.reshape(M, D)

    dt_size = jnp.dtype(x.dtype).itemsize
    pack = _sublane_pack(x.dtype)
    if gelu_dtype is None:
        gelu_dtype = _default_gelu_dtype(x.dtype)

    # --- H tiling (reduction axis): exact divisor of H whenever possible. ---
    th, Hp = _pick_th(H, tile_h)
    if Hp != H:
        # Zero-padding H is exact (GELU(0)=0 and the padded W_proj rows are 0).
        # TODO(synk): pre-pad weights once outside the jitted forward on the
        # rare non-128-divisible-H path to avoid the per-call HBM copy.
        w_fc = jnp.pad(w_fc, ((0, 0), (0, Hp - H)))
        b_fc = jnp.pad(b_fc, ((0, Hp - H),))
        w_proj = jnp.pad(w_proj, ((0, Hp - H), (0, 0)))

    vmem_budget = _vmem_limit_bytes()

    # --- M tiling: biggest tm <= tile_m that fits the per-gen VMEM budget. ---
    tm = min(_round_up(tile_m, pack), _round_up(M, pack))
    while tm > pack and _footprint_bytes(tm, th, D, dt_size) > int(vmem_budget * 0.8):
        tm = max(pack, _round_up(tm // 2, pack))
    Mp = _round_up(M, tm)
    if Mp != M:
        x2 = jnp.pad(x2, ((0, Mp - M), (0, 0)))

    # Biases pre-cast to f32 outside the kernel.
    bfc2 = b_fc.astype(jnp.float32).reshape(1, Hp)
    bproj2 = b_proj.astype(jnp.float32).reshape(1, D)

    grid = (Mp // tm, Hp // th)

    # Advisory cost estimate (weights re-streamed once per M tile).
    n_m_tiles = Mp // tm
    cost_estimate = pl.CostEstimate(
        flops=4 * Mp * Hp * D,
        transcendentals=Mp * Hp,
        bytes_accessed=(2 * D * Hp * dt_size * n_m_tiles
                        + 2 * Mp * D * dt_size
                        + (Hp + D) * 4),
    )

    kernel = functools.partial(_mlp_kernel, gelu_dtype=gelu_dtype)

    out = pl.pallas_call(
        kernel,
        out_shape=jax.ShapeDtypeStruct((Mp, D), x.dtype),
        grid_spec=pltpu.PrefetchScalarGridSpec(
            num_scalar_prefetch=0,
            grid=grid,
            in_specs=[
                pl.BlockSpec((tm, D), lambda i, h: (i, 0)),   # x tile (H-resident)
                pl.BlockSpec((D, th), lambda i, h: (0, h)),   # W_fc hidden chunk
                pl.BlockSpec((1, th), lambda i, h: (0, h)),   # b_fc hidden chunk (f32)
                pl.BlockSpec((th, D), lambda i, h: (h, 0)),   # W_proj hidden chunk
                pl.BlockSpec((1, D), lambda i, h: (0, 0)),    # b_proj (f32)
            ],
            out_specs=pl.BlockSpec((tm, D), lambda i, h: (i, 0)),  # H-resident
            scratch_shapes=[pltpu.VMEM((tm, D), jnp.float32)],     # accumulator
        ),
        compiler_params=pltpu.CompilerParams(
            dimension_semantics=("parallel", "arbitrary"),
            vmem_limit_bytes=vmem_budget,
        ),
        cost_estimate=cost_estimate,
    )(x2, w_fc, bfc2, w_proj, bproj2)

    return out[:M].reshape(B, T, D)


def mlp_reference(x, w_fc, b_fc, w_proj, b_proj):
    xf, wf, bf = x.astype(jnp.float32), w_fc.astype(jnp.float32), b_fc.astype(jnp.float32)
    wp, bp = w_proj.astype(jnp.float32), b_proj.astype(jnp.float32)
    h = jnp.einsum("btd,dh->bth", xf, wf) + bf
    h = 0.5 * h * (1.0 + jnp.tanh(_GELU_C * (h + 0.044715 * h ** 3)))
    return jnp.einsum("bth,hd->btd", h, wp) + bp


if __name__ == "__main__":
    # Small GPT-2-style config: batch=2, seq=8, n_embd=32 (hidden = 4*32 = 128)
    B, T, D = 2, 8, 32
    H = 4 * D

    key = jax.random.PRNGKey(0)
    kx, k1, k2, k3, k4 = jax.random.split(key, 5)

    x = jax.random.normal(kx, (B, T, D), dtype=jnp.float32)
    # nn.Linear(D, 4D).weight is (4D, D); we pass transposed (D, 4D).
    w_fc = jax.random.normal(k1, (D, H), dtype=jnp.float32) * 0.02
    b_fc = jax.random.normal(k2, (H,), dtype=jnp.float32) * 0.02
    # nn.Linear(4D, D).weight is (D, 4D); we pass transposed (4D, D).
    w_proj = jax.random.normal(k3, (H, D), dtype=jnp.float32) * 0.02
    b_proj = jax.random.normal(k4, (D,), dtype=jnp.float32) * 0.02

    # f32 path (tolerance covers possible MXU bf16-pass f32 matmul precision).
    y = jax.block_until_ready(mlp_forward(x, w_fc, b_fc, w_proj, b_proj))
    y_ref = mlp_reference(x, w_fc, b_fc, w_proj, b_proj)
    assert y.shape == (B, T, D)
    assert jnp.allclose(y, y_ref, atol=1e-3, rtol=1e-3), "f32 mismatch vs reference"

    # bf16 path: operands feed the MXU natively (f32 accumulation); looser tol.
    xb, wfb, bfb, wpb, bpb = (a.astype(jnp.bfloat16)
                              for a in (x, w_fc, b_fc, w_proj, b_proj))
    yb = jax.block_until_ready(mlp_forward(xb, wfb, bfb, wpb, bpb))
    yb_ref = mlp_reference(xb, wfb, bfb, wpb, bpb)
    assert yb.shape == (B, T, D)
    assert jnp.allclose(yb.astype(jnp.float32), yb_ref, atol=2e-2, rtol=2e-2), \
        "bf16 mismatch vs reference"

    print("KERNEL_OK")
</pallas_src>

<mosaic_0001>
module attributes {stable_mosaic.version = 11 : i64} {
  func.func @_mlp_kernel(%arg0: i32, %arg1: i32, %arg2: memref<16x32xf32, #tpu.memory_space<vmem>>, %arg3: memref<32x128xf32, #tpu.memory_space<vmem>>, %arg4: memref<1x128xf32, #tpu.memory_space<vmem>>, %arg5: memref<128x32xf32, #tpu.memory_space<vmem>>, %arg6: memref<1x32xf32, #tpu.memory_space<vmem>>, %arg7: memref<16x32xf32, #tpu.memory_space<vmem>>, %arg8: memref<16x32xf32, #tpu.memory_space<vmem>>) attributes {dimension_semantics = [#tpu.dimension_semantics<parallel>, #tpu.dimension_semantics<arbitrary>], iteration_bounds = array<i64: 1, 1>, scalar_prefetch = 0 : i64, scratch_operands = 1 : i64, tpu.core_type = #tpu.core_type<tc>, window_params = [{transform_indices = @transform_0, window_bounds = array<i64: 16, 32>}, {transform_indices = @transform_1, window_bounds = array<i64: 32, 128>}, {transform_indices = @transform_2, window_bounds = array<i64: 1, 128>}, {transform_indices = @transform_3, window_bounds = array<i64: 128, 32>}, {pipeline_mode = #tpu.pipeline_mode<synchronous>, transform_indices = @transform_4, window_bounds = array<i64: 1, 32>}, {transform_indices = @transform_5, window_bounds = array<i64: 16, 32>}]} {
    %c0 = arith.constant 0 : index
    %c0_0 = arith.constant 0 : index
    %0 = vector.load %arg2[%c0, %c0_0] : memref<16x32xf32, #tpu.memory_space<vmem>>, vector<16x32xf32>
    %c0_1 = arith.constant 0 : index
    %c0_2 = arith.constant 0 : index
    %1 = vector.load %arg3[%c0_1, %c0_2] : memref<32x128xf32, #tpu.memory_space<vmem>>, vector<32x128xf32>
    %cst = arith.constant dense<0.000000e+00> : vector<16x128xf32>
    %2 = tpu.matmul %0, %1, %cst {dimension_numbers = #tpu.dot_dimension_numbers<[1], [0], [0], [1], [0, 0, 1, 1], [], []>} : vector<16x32xf32>, vector<32x128xf32>, vector<16x128xf32> -> vector<16x128xf32>
    %c0_3 = arith.constant 0 : index
    %c0_4 = arith.constant 0 : index
    %3 = vector.load %arg4[%c0_3, %c0_4] : memref<1x128xf32, #tpu.memory_space<vmem>>, vector<1x128xf32>
    %4 = vector.broadcast %3 : vector<1x128xf32> to vector<16x128xf32>
    %5 = arith.addf %2, %4 : vector<16x128xf32>
    %cst_5 = arith.constant 5.000000e-01 : f32
    %6 = vector.broadcast %cst_5 : f32 to vector<16x128xf32>
    %7 = arith.mulf %6, %5 : vector<16x128xf32>
    %cst_6 = arith.constant 4.471500e-02 : f32
    %8 = vector.broadcast %cst_6 : f32 to vector<16x128xf32>
    %9 = arith.mulf %8, %5 : vector<16x128xf32>
    %10 = arith.mulf %9, %5 : vector<16x128xf32>
    %11 = arith.mulf %10, %5 : vector<16x128xf32>
    %12 = arith.addf %5, %11 : vector<16x128xf32>
    %cst_7 = arith.constant 0.797884583 : f32
    %13 = vector.broadcast %cst_7 : f32 to vector<16x128xf32>
    %14 = arith.mulf %13, %12 : vector<16x128xf32>
    %15 = math.tanh %14 : vector<16x128xf32>
    %cst_8 = arith.constant 1.000000e+00 : f32
    %16 = vector.broadcast %cst_8 : f32 to vector<16x128xf32>
    %17 = arith.addf %16, %15 : vector<16x128xf32>
    %18 = arith.mulf %7, %17 : vector<16x128xf32>
    %c0_9 = arith.constant 0 : index
    %c0_10 = arith.constant 0 : index
    %19 = vector.load %arg5[%c0_9, %c0_10] : memref<128x32xf32, #tpu.memory_space<vmem>>, vector<128x32xf32>
    %cst_11 = arith.constant dense<0.000000e+00> : vector<16x32xf32>
    %20 = tpu.matmul %18, %19, %cst_11 {dimension_numbers = #tpu.dot_dimension_numbers<[1], [0], [0], [1], [0, 0, 1, 1], [], []>} : vector<16x128xf32>, vector<128x32xf32>, vector<16x32xf32> -> vector<16x32xf32>
    %c0_i32 = arith.constant 0 : i32
    %21 = arith.cmpi eq, %arg1, %c0_i32 : i32
    %22 = arith.extui %21 : i1 to i32
    %c0_i32_12 = arith.constant 0 : i32
    %23 = arith.cmpi ne, %22, %c0_i32_12 : i32
    scf.if %23 {
      %c0_17 = arith.constant 0 : index
      %c0_18 = arith.constant 0 : index
      %30 = vector.load %arg8[%c0_17, %c0_18] : memref<16x32xf32, #tpu.memory_space<vmem>>, vector<16x32xf32>
      tpu.vector_store %arg8[%c0_17, %c0_18], %20 {strides = array<i32>} : memref<16x32xf32, #tpu.memory_space<vmem>>, vector<16x32xf32>,
    } else {
    }
    %c0_i32_13 = arith.constant 0 : i32
    %24 = arith.cmpi sgt, %arg1, %c0_i32_13 : i32
    %25 = arith.extui %24 : i1 to i32
    %c0_i32_14 = arith.constant 0 : i32
    %26 = arith.cmpi ne, %25, %c0_i32_14 : i32
    scf.if %26 {
      %c0_17 = arith.constant 0 : index
      %c0_18 = arith.constant 0 : index
      %30 = vector.load %arg8[%c0_17, %c0_18] : memref<16x32xf32, #tpu.memory_space<vmem>>, vector<16x32xf32>
      %31 = arith.addf %30, %20 : vector<16x32xf32>
      %c0_19 = arith.constant 0 : index
      %c0_20 = arith.constant 0 : index
      %32 = vector.load %arg8[%c0_19, %c0_20] : memref<16x32xf32, #tpu.memory_space<vmem>>, vector<16x32xf32>
      tpu.vector_store %arg8[%c0_19, %c0_20], %31 {strides = array<i32>} : memref<16x32xf32, #tpu.memory_space<vmem>>, vector<16x32xf32>,
    } else {
    }
    %c0_i32_15 = arith.constant 0 : i32
    %27 = arith.cmpi eq, %arg1, %c0_i32_15 : i32
    %28 = arith.extui %27 : i1 to i32
    %c0_i32_16 = arith.constant 0 : i32
    %29 = arith.cmpi ne, %28, %c0_i32_16 : i32
    scf.if %29 {
      %c0_17 = arith.constant 0 : index
      %c0_18 = arith.constant 0 : index
      %30 = vector.load %arg8[%c0_17, %c0_18] : memref<16x32xf32, #tpu.memory_space<vmem>>, vector<16x32xf32>
      %c0_19 = arith.constant 0 : index
      %c0_20 = arith.constant 0 : index
      %31 = vector.load %arg6[%c0_19, %c0_20] : memref<1x32xf32, #tpu.memory_space<vmem>>, vector<1x32xf32>
      %32 = vector.broadcast %31 : vector<1x32xf32> to vector<16x32xf32>
      %33 = arith.addf %30, %32 : vector<16x32xf32>
      %c0_21 = arith.constant 0 : index
      %c0_22 = arith.constant 0 : index
      %34 = vector.load %arg7[%c0_21, %c0_22] : memref<16x32xf32, #tpu.memory_space<vmem>>, vector<16x32xf32>
      tpu.vector_store %arg7[%c0_21, %c0_22], %33 {strides = array<i32>} : memref<16x32xf32, #tpu.memory_space<vmem>>, vector<16x32xf32>,
    } else {
    }
    return
  }
  func.func @transform_0(%arg0: i32, %arg1: i32) -> (i32, i32) {
    %c0_i32 = arith.constant 0 : i32
    %c0_i32_0 = arith.constant 0 : i32
    return %arg0, %c0_i32 : i32, i32
  }
  func.func @transform_1(%arg0: i32, %arg1: i32) -> (i32, i32) {
    %c0_i32 = arith.constant 0 : i32
    %c0_i32_0 = arith.constant 0 : i32
    return %c0_i32, %arg1 : i32, i32
  }
  func.func @transform_2(%arg0: i32, %arg1: i32) -> (i32, i32) {
    %c0_i32 = arith.constant 0 : i32
    %c0_i32_0 = arith.constant 0 : i32
    return %c0_i32, %arg1 : i32, i32
  }
  func.func @transform_3(%arg0: i32, %arg1: i32) -> (i32, i32) {
    %c0_i32 = arith.constant 0 : i32
    %c0_i32_0 = arith.constant 0 : i32
    return %arg1, %c0_i32 : i32, i32
  }
  func.func @transform_4(%arg0: i32, %arg1: i32) -> (i32, i32) {
    %c0_i32 = arith.constant 0 : i32
    %c0_i32_0 = arith.constant 0 : i32
    %c0_i32_1 = arith.constant 0 : i32
    return %c0_i32, %c0_i32_0 : i32, i32
  }
  func.func @transform_5(%arg0: i32, %arg1: i32) -> (i32, i32) {
    %c0_i32 = arith.constant 0 : i32
    %c0_i32_0 = arith.constant 0 : i32
    return %arg0, %c0_i32 : i32, i32
  }
}

</mosaic_0001>

<bundles_post_ra>
// kernel: tpu_custom_call.1
= control target key start
LH: loop header
LB: loop body
LE: loop exit
PB: predicated region body
PF: predicated region fallthrough
CT: control target
= control target key end

     0   :  { %10 = vsyncpa [#allocation4], 0  ;;  %s741_s0 = inlined_call_operand.hbm [shape: f32[16,32], index: 0, kind: input, shape index: {}]   ;;  %s742_s1 = inlined_call_operand.hbm [shape: f32[32,128], index: 1, kind: input, shape index: {}]   ;;  %s743_s2 = inlined_call_operand.hbm [shape: f32[1,128], index: 2, kind: input, shape index: {}]   ;;  %s744_s3 = inlined_call_operand.hbm [shape: f32[128,32], index: 3, kind: input, shape index: {}]   ;;  %s745_s4 = inlined_call_operand.hbm [shape: f32[1,32], index: 4, kind: input, shape index: {}]   ;;  %s746_s5 = inlined_call_operand.hbm [shape: f32[16,32], index: 5, kind: output, shape index: {}]  }
   0x1   :  { %11 = vsyncpa [#allocation7], 0 }
   0x2   :  { %12 = vsyncpa [#allocation10], 0 }
   0x3   :  { %13 = vsyncpa [#allocation5], 0  ;;  %s606_s18 = smov [#allocation6]   ;;  %s607_s20 = smov [#allocation9]  }
   0x4   :  { %s31_s19 = sshll.u32 %s606_s18, 4  ;;  %s53_s21 = sshll.u32 %s607_s20, 4  ;;  %s32_s19 = int_to_ptr.vmem [resolvable:$true] %s31_s19  ;;  %s644_s21 = int_to_ptr.vmem [resolvable:$true] %s53_s21 }
   0x5   :  { %s466_s24 = scalar_lea.hbm %s742_s1, 512 }
   0x6   :  { %p467_p0 = scmp.ne.s32.totalorder %s742_s1, %s466_s24  ;;  %p470_p1 = scmp.lt.u32.totalorder %s466_s24, %s742_s1 }
   0x8   :  { %p472_p2 = pnand %p470_p1, %p467_p0 }
   0xa   :  { %475 = shalt.err (!%p472_p2)
}
   0xb   :  { %s476_s29 = scalar_lea.vmem %s32_s19, 512  ;;  %p481_p4 = scmp.lt.s32.totalorder %s32_s19, %s32_s19 }
   0xc   :  { %p477_p3 = scmp.ne.s32.totalorder %s32_s19, %s476_s29  ;;  %p482_p5 = scmp.lt.s32.totalorder %s476_s29, %s476_s29 }
   0xe   :  { %p483_p6 = por %p482_p5, %p481_p4 }
  0x10   :  { %p484_p7 = pnand %p483_p6, %p477_p3 }
  0x12   :  { %487 = shalt.err (!%p484_p7)
}
  0x13   :  { %s608_s30 = smov 128   ;;  %s609_s6 = smov 8  }
  0x14   :  { %37 = dma.hbm_to_vmem [thread:$0]  %s742_s1, 512, %s32_s19, [#allocation7], %s608_s30, %s608_s30, %s609_s6  }
  0x15   :  { %s488_s11 = scalar_lea.hbm %s744_s3, 2048 }
  0x16   :  { %p489_p8 = scmp.ne.s32.totalorder %s744_s3, %s488_s11  ;;  %p492_p9 = scmp.lt.u32.totalorder %s488_s11, %s744_s3 }
  0x18   :  { %p494_p10 = pnand %p492_p9, %p489_p8 }
  0x1a   :  { %497 = shalt.err (!%p494_p10)
}
  0x1b   :  { %s498_s16 = scalar_lea.vmem %s644_s21, 2048  ;;  %p503_p12 = scmp.lt.s32.totalorder %s644_s21, %s644_s21 }
  0x1c   :  { %p499_p11 = scmp.ne.s32.totalorder %s644_s21, %s498_s16  ;;  %p504_p13 = scmp.lt.s32.totalorder %s498_s16, %s498_s16 }
  0x1e   :  { %p505_p0 = por %p504_p13, %p503_p12 }
  0x20   :  { %p506_p1 = pnand %p505_p0, %p499_p11 }
  0x22   :  { %509 = shalt.err (!%p506_p1)
}
  0x23   :  { %59 = dma.hbm_to_vmem [thread:$0]  %s744_s3, 2048, %s644_s21, [#allocation10], %s608_s30, %s608_s30, %s609_s6  }
  0x24   :  { %s610_s18 = smov [#allocation3]   ;;  %s611_s20 = smov [#allocation8]  }
  0x25   :  { %s19_s19 = sshll.u32 %s610_s18, 4  ;;  %s44_s22 = sshll.u32 %s611_s20, 4  ;;  %s20_s19 = int_to_ptr.vmem [resolvable:$true] %s19_s19  ;;  %s45_s22 = int_to_ptr.vmem [resolvable:$true] %s44_s22 }
  0x26   :  { %s510_s25 = scalar_lea.hbm %s741_s0, 256 }
  0x27   :  { %p511_p2 = scmp.ne.s32.totalorder %s741_s0, %s510_s25  ;;  %p514_p3 = scmp.lt.u32.totalorder %s510_s25, %s741_s0 }
  0x29   :  { %p516_p4 = pnand %p514_p3, %p511_p2 }
  0x2b   :  { %519 = shalt.err (!%p516_p4)
}
  0x2c   :  { %s520_s3 = scalar_lea.vmem %s20_s19, 256  ;;  %p525_p6 = scmp.lt.s32.totalorder %s20_s19, %s20_s19 }
  0x2d   :  { %p521_p5 = scmp.ne.s32.totalorder %s20_s19, %s520_s3  ;;  %p526_p7 = scmp.lt.s32.totalorder %s520_s3, %s520_s3 }
  0x2f   :  { %p527_p8 = por %p526_p7, %p525_p6 }
  0x31   :  { %p528_p9 = pnand %p527_p8, %p521_p5 }
  0x33   :  { %531 = shalt.err (!%p528_p9)
}
  0x34   :  { %25 = dma.hbm_to_vmem [thread:$0]  %s741_s0, 256, %s20_s19, [#allocation4], %s608_s30, %s608_s30, %s609_s6  }
  0x35   :  { %s532_s10 = scalar_lea.hbm %s743_s2, 16 }
  0x36   :  { %p533_p10 = scmp.ne.s32.totalorder %s743_s2, %s532_s10  ;;  %p536_p11 = scmp.lt.u32.totalorder %s532_s10, %s743_s2 }
  0x38   :  { %p538_p12 = pnand %p536_p11, %p533_p10 }
  0x3a   :  { %541 = shalt.err (!%p538_p12)
}
  0x3b   :  { %s542_s15 = scalar_lea.vmem %s45_s22, 16  ;;  %s546_s16 = scalar_lea.vmem %s45_s22, 32 }
  0x3c   :  { %p543_p13 = scmp.ne.s32.totalorder %s45_s22, %s542_s15  ;;  %p547_p0 = scmp.lt.s32.totalorder %s45_s22, %s45_s22 }
  0x3d   :  { %p548_p1 = scmp.lt.s32.totalorder %s546_s16, %s542_s15 }
  0x3f   :  { %p549_p2 = por %p548_p1, %p547_p0 }
  0x41   :  { %p550_p3 = pnand %p549_p2, %p543_p13 }
  0x43   :  { %553 = shalt.err (!%p550_p3)
}
  0x44   :  { %47 = dma.hbm_to_vmem [thread:$0]  %s743_s2, 16, %s45_s22, [#allocation7]  }
  0x45   :  { %s612_s17 = smov [#allocation11]   ;;  %s554_s23 = scalar_lea.hbm %s745_s4, 16 }
  0x46   :  { %s66_s18 = sshll.u32 %s612_s17, 4  ;;  %p555_p4 = scmp.ne.s32.totalorder %s745_s4, %s554_s23  ;;  %s67_s18 = int_to_ptr.vmem [resolvable:$true] %s66_s18 }
  0x47   :  { %p558_p5 = scmp.lt.u32.totalorder %s554_s23, %s745_s4 }
  0x49   :  { %p560_p6 = pnand %p558_p5, %p555_p4 }
  0x4b   :  { %563 = shalt.err (!%p560_p6)
}
  0x4c   :  { %s564_s28 = scalar_lea.vmem %s67_s18, 16  ;;  %s568_s2 = scalar_lea.vmem %s67_s18, 32 }
  0x4d   :  { %p565_p7 = scmp.ne.s32.totalorder %s67_s18, %s564_s28  ;;  %p569_p8 = scmp.lt.s32.totalorder %s67_s18, %s67_s18 }
  0x4e   :  { %p570_p9 = scmp.lt.s32.totalorder %s568_s2, %s564_s28 }
  0x50   :  { %p571_p10 = por %p570_p9, %p569_p8 }
  0x52   :  { %p572_p11 = pnand %p571_p10, %p565_p7 }
  0x54   :  { %575 = shalt.err (!%p572_p11)
}
  0x55   :  { %69 = dma.hbm_to_vmem [thread:$0]  %s745_s4, 16, %s67_s18, [#allocation10]  }
  0x56   :  { %598 = dma.done.wait [#allocation4], 256  }
  0x57   :  { %599 = vsyncadd [#allocation4], 4294967040 }
  0x58   :  { %600 = dma.done.wait [#allocation7], 528  }
  0x59   :  { %601 = vsyncadd [#allocation7], 4294966768 }
  0x5a   :  { %602 = dma.done.wait [#allocation10], 2064  }
  0x5b   :  { %603 = vsyncadd [#allocation10], 4294965232  ;;  %vm98_vm0 = vcmask 261120   ;;  %v87_v0 = vld [vmem:[#allocation6] sm:$0xff]  ;;  %v88_v1 = vld [vmem:[#allocation6 + $0x8] sm:$0xff]  ;;  %s613_s4 = smov [#allocation12]  }
  0x5c   :  { %v89_v2 = vld [vmem:[#allocation6 + $0x10] sm:$0xff]  ;;  %v414_v3 = vpack.c.bf16 %v88_v1, %v87_v0  ;;  %v90_v4 = vld [vmem:[#allocation6 + $0x18] sm:$0xff]  ;;  %v198_v7 = vld [vmem:[#allocation9] sm:$0xff]  ;;  %s326_s3 = sshll.u32 %s613_s4, 4  ;;  %s327_s3 = int_to_ptr.vmem [resolvable:$true] %s326_s3 }
  0x5d   :  { %v85_v5 = vld [vmem:[#allocation3] sm:$0xff]  ;;  %v418_v6 = vpack.c.bf16 %v90_v4, %v89_v2  ;;  %v86_v10 = vld [vmem:[#allocation3 + $0x8] sm:$0xff]  ;;  %v202_v14 = vld [vmem:[#allocation9 + $0x20] sm:$0xff]  ;;  %s576_s21 = scalar_lea.vmem %s327_s3, 256  ;;  %p581_p13 = scmp.lt.s32.totalorder %s327_s3, %s327_s3 }
  0x5e   :  { %376 = vmatprep.mubr.msk.f32.mxu0 %vm98_vm0, %v85_v5  ;;  %v199_v8 = vld [vmem:[#allocation9 + $0x8] sm:$0xff]  ;;  %415 = vmatprep.subr.bf16.mxu0 %v414_v3  ;;  %v200_v11 = vld [vmem:[#allocation9 + $0x10] sm:$0xff]  ;;  %v201_v12 = vld [vmem:[#allocation9 + $0x18] sm:$0xff]  ;;  %p577_p12 = scmp.ne.s32.totalorder %s327_s3, %s576_s21  ;;  %p582_p0 = scmp.lt.s32.totalorder %s576_s21, %s576_s21 }
  0x5f   :  { %v422_v9 = vpack.c.bf16 %v199_v8, %v198_v7  ;;  %417 = vmatpush3.bf16.msra.mxu0 %v414_v3  ;;  %v426_v13 = vpack.c.bf16 %v201_v12, %v200_v11  ;;  %v203_v15 = vld [vmem:[#allocation9 + $0x28] sm:$0xff]  ;;  %v204_v17 = vld [vmem:[#allocation9 + $0x30] sm:$0xff]  ;;  %v205_v18 = vld [vmem:[#allocation9 + $0x38] sm:$0xff] }
  0x60   :  { %419 = vmatprep.subr.bf16.mxu0 %v418_v6  ;;  %v430_v16 = vpack.c.bf16 %v203_v15, %v202_v14  ;;  %v206_v19 = vld [vmem:[#allocation9 + $0x40] sm:$0xff]  ;;  %v434_v20 = vpack.c.bf16 %v205_v18, %v204_v17  ;;  %v207_v21 = vld [vmem:[#allocation9 + $0x48] sm:$0xff]  ;;  %v208_v23 = vld [vmem:[#allocation9 + $0x50] sm:$0xff]  ;;  %p583_p1 = por %p582_p0, %p581_p13 }
  0x61   :  { %423 = vmatprep.subr.bf16.mxu1 %v422_v9  ;;  %v438_v22 = vpack.c.bf16 %v207_v21, %v206_v19  ;;  %v209_v24 = vld [vmem:[#allocation9 + $0x58] sm:$0xff]  ;;  %v210_v26 = vld [vmem:[#allocation9 + $0x60] sm:$0xff]  ;;  %v211_v27 = vld [vmem:[#allocation9 + $0x68] sm:$0xff] }
  0x62   :  { %425 = vmatpush3.bf16.msra.mxu1 %v422_v9  ;;  %v442_v25 = vpack.c.bf16 %v209_v24, %v208_v23  ;;  %v446_v28 = vpack.c.bf16 %v211_v27, %v210_v26  ;;  %v212_v29 = vld [vmem:[#allocation9 + $0x70] sm:$0xff]  ;;  %v213_v30 = vld [vmem:[#allocation9 + $0x78] sm:$0xff]  ;;  %v343_v57 = vld [vmem:[#allocation11] ss:$0 sm:$0xff]  ;;  %p584_p2 = pnand %p583_p1, %p577_p12 }
  0x63   :  { %421 = vmatpush3.bf16.msra.mxu0 %v418_v6  ;;  %427 = vmatprep.subr.bf16.mxu1 %v426_v13  ;;  %v450_v31 = vpack.c.bf16 %v213_v30, %v212_v29  ;;  %v340_v32 = vld [vmem:[#allocation8] ss:$0 sm:$0xff] }
  0x66   :  { %377 = vmatmul.mubr.msk.f32.vlgmr.msra.gmra.mrb[0].mxu0 %vm98_vm0, %v86_v10  ;;  %429 = vmatpush3.bf16.msra.mxu1 %v426_v13 }
  0x67   :  { %431 = vmatprep.subr.bf16.mxu1 %v430_v16 }
  0x6a   :  { %433 = vmatpush3.bf16.msra.mxu1 %v430_v16 }
  0x6b   :  { %435 = vmatprep.subr.bf16.mxu1 %v434_v20 }
  0x6e   :  { %437 = vmatpush3.bf16.msra.mxu1 %v434_v20 }
  0x6f   :  { %439 = vmatprep.subr.bf16.mxu1 %v438_v22 }
  0x72   :  { %441 = vmatpush3.bf16.msra.mxu1 %v438_v22 }
  0x73   :  { %443 = vmatprep.subr.bf16.mxu1 %v442_v25 }
  0x76   :  { %445 = vmatpush3.bf16.msra.mxu1 %v442_v25 }
  0x77   :  { %447 = vmatprep.subr.bf16.mxu1 %v446_v28 }
  0x7a   :  { %449 = vmatpush3.bf16.msra.mxu1 %v446_v28 }
  0x7b   :  { %451 = vmatprep.subr.bf16.mxu1 %v450_v31 }
  0x7e   :  { %453 = vmatpush3.bf16.msra.mxu1 %v450_v31 }
 0x139   :  { %v378_v33 = vpop.f32.mrb[0].mxu0 }
 0x13a   :  { %v177_v34 = vadd.f32 %v378_v33, %v340_v32  ;;  %v171_v35 = vpop.f32.mrb[1].mxu0 }
 0x13b   :  { %v172_v36 = vadd.f32 %v340_v32, %v171_v35 }
 0x13c   :  { %v183_v37 = vmul.f32 0.044715, %v177_v34  ;;  %v181_v52 = vmul.f32 0.5, %v177_v34 }
 0x13d   :  { %v182_v38 = vmul.f32 0.044715, %v172_v36  ;;  %v180_v50 = vmul.f32 0.5, %v172_v36 }
 0x13e   :  { %v185_v39 = vmul.f32 %v183_v37, %v177_v34 }
 0x13f   :  { %v184_v40 = vmul.f32 %v182_v38, %v172_v36 }
 0x140   :  { %v187_v41 = vmul.f32 %v185_v39, %v177_v34 }
 0x141   :  { %v186_v42 = vmul.f32 %v184_v40, %v172_v36 }
 0x142   :  { %v189_v43 = vadd.f32 %v187_v41, %v177_v34 }
 0x143   :  { %v188_v44 = vadd.f32 %v186_v42, %v172_v36 }
 0x144   :  { %v191_v45 = vmul.f32 0.7978846, %v189_v43 }
 0x145   :  { %v190_v46 = vmul.f32 0.7978846, %v188_v44 }
 0x146   :  { %462 = vtanh.f32 %v191_v45 }
 0x147   :  { %464 = vtanh.f32 %v190_v46 }
 0x150   :  { %v463_v47 = vpop.eup %462 }
 0x151   :  { %v465_v48 = vpop.eup %464  ;;  %v195_v49 = vadd.f32 1.0, %v463_v47 }
 0x152   :  { %v194_v51 = vadd.f32 1.0, %v465_v48 }
 0x153   :  { %v197_v54 = vmul.f32 %v195_v49, %v181_v52 }
 0x154   :  { %v196_v53 = vmul.f32 %v194_v51, %v180_v50 }
 0x156   :  { %411 = vmatprep.mubr.f32.mxu1 %v196_v53 }
 0x157   :  { %412 = vmatmul.mubr.f32.vlgmr.msra.gmra.mrb[0].mxu1 %v197_v54 }
 0x22a   :  { %v413_v55 = vpop.f32.mrb[0].mxu1 }
 0x22b   :  { %294 = vst.msk [vmem:[#allocation2 + $0x8] sm:$0xff] %vm98_vm0, %v413_v55  ;;  %v280_v56 = vpop.f32.mrb[1].mxu1 }
 0x22c   :  { %293 = vst.msk [vmem:[#allocation2] sm:$0xff] %vm98_vm0, %v280_v56 }
 0x232   :  { %v309_v58 = vld [vmem:[#allocation2 + $0x8] sm:$0xff] }
 0x233   :  { %v308_v59 = vld [vmem:[#allocation2] sm:$0xff]  ;;  %v318_v60 = vadd.f32 %v343_v57, %v309_v58 }
 0x234   :  { %v317_v61 = vadd.f32 %v343_v57, %v308_v59 }
 0x235   :  { %320 = vst.msk [vmem:[#allocation12 + $0x8] sm:$0xff] %vm98_vm0, %v318_v60 }
 0x236   :  { %319 = vst.msk [vmem:[#allocation12] sm:$0xff] %vm98_vm0, %v317_v61 }
 0x237   :  { %587 = shalt.err (!%p584_p2)
}
 0x238   :  { %s588_s9 = scalar_lea.hbm %s746_s5, 256 }
 0x239   :  { %p589_p3 = scmp.ne.s32.totalorder %s746_s5, %s588_s9  ;;  %p592_p4 = scmp.lt.u32.totalorder %s588_s9, %s746_s5 }
 0x23b   :  { %p594_p5 = pnand %p592_p4, %p589_p3 }
 0x23d   :  { %597 = shalt.err (!%p594_p5)
}
 0x23e   :  { %332 = dma.vmem_to_hbm [thread:$0]  %s327_s3, 256, %s746_s5, [#allocation5], %s608_s30, %s608_s30, %s609_s6  }
 0x23f   :  { %604 = dma.done.wait [#allocation5], 256  }
 0x240   :  { %605 = vsyncadd [#allocation5], 4294967040 }
 0x241   :  { %336 = vsyncpa [#allocation4], 1 }
 0x242   :  { %337 = vsyncpa [#allocation7], 1 }
 0x243   :  { %338 = vsyncpa [#allocation10], 1 }
 0x244   :  { %339 = vsyncpa [#allocation5], 1 }

</bundles_post_ra>
